<compile_context>
chip_gen: v7x
topology: tpu7x:2x2x1
jax: 0.10.0
libtpu: 0.0.40
codegen_flags: <defaults>
</compile_context>

<pallas_src>
import functools

import numpy as np
import jax
import jax.numpy as jnp
from jax import lax
from jax.experimental import pallas as pl
from jax.experimental.pallas import tpu as pltpu


# Deterministic "parameter" of the module (its __init__ config): the affinity
# neighborhood.  Mix of signs / magnitudes / a diagonal to exercise both axes.
NEIGHBORHOOD = ((0, 1), (1, 0), (0, -3), (-3, 0), (2, -2))


def _round_up(x: int, m: int) -> int:
    return -(-x // m) * m


@functools.lru_cache(maxsize=None)
def _bool_refs_supported() -> bool:
    """Tiny capability probe: can this toolchain load/store bool Pallas refs?

    The probe is a single (8, 128) kernel; failures of the *main* kernel are
    never swallowed here (this replaces the previous blanket try/except).
    """
    def probe(x_ref, o_ref):
        o_ref[...] = jnp.logical_not(x_ref[...])

    try:
        x = jnp.zeros((8, 128), jnp.bool_)
        out = pl.pallas_call(
            probe, out_shape=jax.ShapeDtypeStruct((8, 128), jnp.bool_))(x)
        jax.block_until_ready(out)
        return True
    except Exception:
        return False


def _fg(vals):
    # torch does mask.int() > 0 (truncation toward zero), so for float masks the
    # foreground test is `x >= 1` (0.5 must be background), not `x > 0`.
    if jnp.issubdtype(vals.dtype, jnp.floating):
        return vals >= jnp.asarray(1, vals.dtype)
    return vals > 0


def _load(ref):
    v = ref[...]
    if v.dtype == jnp.bool_:
        v = v.astype(jnp.uint8)  # keep slices/concats off i1 masks; still 1 byte
    return v


def _make_kernel(neigh, *, H, W, TH, HB, has_top, has_bot, multi):
    """Builds the (b, row-tile) kernel body. All shape/offset config is static."""

    def kernel(*refs):
        it = iter(refs)
        center_ref = next(it)
        top_ref = next(it) if has_top else None
        bot_ref = next(it) if has_bot else None
        out_ref = next(it)

        center = _load(center_ref)                  # (TH, W) native values
        fg_c = _fg(center)                          # hoisted: one compare per tile
        top = _load(top_ref) if has_top else None   # (HB, W) halo above the tile
        bot = _load(bot_ref) if has_bot else None   # (HB, W) halo below the tile

        need_row_mask = multi and any(dy != 0 for dy, _ in neigh)
        if need_row_mask:
            # Global output-row index; only a (TH, 1) strip, only the row axis.
            t = pl.program_id(1)
            g = t * TH + lax.broadcasted_iota(jnp.int32, (TH, 1), 0)

        for k, (dy, dx) in enumerate(neigh):
            # ---- row shift: neighbour row = output row + dy ----
            if dy == 0:
                nbr = center
            elif multi:
                if dy > 0:
                    nbr = jnp.concatenate([center[dy:, :], bot[:dy, :]], axis=0)
                else:
                    nbr = jnp.concatenate(
                        [top[HB + dy:, :], center[:TH + dy, :]], axis=0)
            else:  # single tile covers the full height: OOB rows are zeros
                if abs(dy) >= TH:
                    nbr = jnp.zeros_like(center)
                elif dy > 0:
                    nbr = jnp.concatenate(
                        [center[dy:, :], jnp.zeros((dy, W), center.dtype)], axis=0)
                else:
                    nbr = jnp.concatenate(
                        [jnp.zeros((-dy, W), center.dtype), center[:TH + dy, :]],
                        axis=0)

            # ---- column shift: neighbour col = output col + dx; OOB -> zeros ----
            if dx != 0:
                if abs(dx) >= W:
                    nbr = jnp.zeros_like(nbr)
                elif dx > 0:
                    nbr = jnp.concatenate(
                        [nbr[:, dx:], jnp.zeros((TH, dx), nbr.dtype)], axis=1)
                else:
                    nbr = jnp.concatenate(
                        [jnp.zeros((TH, -dx), nbr.dtype), nbr[:, :W + dx]], axis=1)

            aff = fg_c & _fg(nbr)

            # Row-validity mask: zero rows whose neighbour falls outside the
            # volume (also covers the clamped / partially-filled halo blocks at
            # the first and last tiles).  Multi-tile path + dy != 0 only.
            if multi and dy > 0:
                aff = aff & (g <= (H - 1) - dy)
            elif multi and dy < 0:
                aff = aff & (g >= -dy)

            # One full, lane-dense (TH, W) store per offset.
            out_ref[k] = aff.astype(out_ref.dtype)

    return kernel


def affs_mask(mask: jax.Array, neighborhood=NEIGHBORHOOD, pad: bool = True,
              *, tile_rows: int | None = None) -> jax.Array:
    """JAX/Pallas equivalent of AffsMask(neighborhood, pad=True).forward(mask)."""
    # TODO(synk): pad=False branch (per-offset min-shape cropping before stacking)
    # not implemented; the module default (pad=True) is reproduced here.
    assert pad, "only pad=True (module default) is implemented"

    squeeze_batch = mask.ndim == 2
    if squeeze_batch:
        mask = mask[None]
    assert mask.ndim == 3, "mask must be (H, W) or (B, H, W) for 2-D offsets"
    neigh = tuple((int(o[0]), int(o[1])) for o in neighborhood)
    K = len(neigh)
    B, H, W = mask.shape

    bool_ok = _bool_refs_supported()
    if mask.dtype == jnp.bool_ and not bool_ok:
        mask = mask.astype(jnp.uint8)  # still a 1-byte/elem HBM read
    out_dtype = jnp.bool_ if bool_ok else jnp.uint8
    in_isz = jnp.dtype(mask.dtype).itemsize

    halo_top = max([0] + [-dy for dy, _ in neigh if dy < 0])
    halo_bot = max([0] + [dy for dy, _ in neigh if dy > 0])
    HB = max(8, _round_up(max(halo_top, halo_bot, 1), 8))  # halo block rows

    # Row-tile height: keep double-buffered blocks + temporaries at a few MiB so
    # the kernel sits under every generation's scoped-VMEM default (16 MiB on
    # v5e, far below v7x's 64 MiB physical VMEM) while tiles stay large enough
    # to run near the HBM roofline.
    if tile_rows is None:
        per_row = W * (2 * in_isz          # center block, double-buffered
                       + 2 * K             # K 1-byte output planes, double-buffered
                       + 2 * in_isz + 2)   # nbr / fg / aff temporaries
        tile_rows = int((4 << 20) // max(per_row, 1))
    TH = max(HB, (int(tile_rows) // HB) * HB)
    TH = min(TH, 1024)

    multi = TH < H
    if not multi:
        TH = H  # one tile covers the full height exactly (no halo, no masks)
    T = pl.cdiv(H, TH)
    has_top = multi and halo_top > 0
    has_bot = multi and halo_bot > 0
    R = TH // HB if multi else 1          # center tile measured in halo blocks
    NB = pl.cdiv(H, HB)                   # number of halo-granularity row blocks

    in_specs = [pl.BlockSpec((None, TH, W), lambda b, t: (b, t, 0))]
    operands = [mask]
    if has_top:   # HB-row group just above the tile (clamped at the top edge)
        in_specs.append(pl.BlockSpec(
            (None, HB, W), lambda b, t: (b, jnp.maximum(t * R - 1, 0), 0)))
        operands.append(mask)
    if has_bot:   # HB-row group just below the tile (clamped at the bottom edge)
        in_specs.append(pl.BlockSpec(
            (None, HB, W), lambda b, t: (b, jnp.minimum(t * R + R, NB - 1), 0)))
        operands.append(mask)
    # TODO(synk): if the output DMA shows up exposed on v7x, bump this spec to
    # pipeline_mode=pl.Buffered(3).
    out_spec = pl.BlockSpec((K, None, TH, W), lambda b, t: (0, b, t, 0))

    # Per-step VMEM estimate: double-buffered blocks + in-kernel temporaries.
    est = (2 * TH * W * in_isz
           + (int(has_top) + int(has_bot)) * 2 * HB * W * in_isz
           + 2 * K * TH * W
           + 3 * TH * W * (in_isz + 1))
    cp_kwargs = dict(dimension_semantics=("parallel", "parallel"))
    if est > (12 << 20):  # v5e's scoped-VMEM default is only 16 MiB
        try:
            cap = pltpu.get_tpu_info().vmem_capacity_bytes
        except Exception:
            cap = 64 << 20  # smallest current per-TensorCore VMEM (v7x)
        cp_kwargs["vmem_limit_bytes"] = int(min(2 * est, (3 * cap) // 4))

    kernel = _make_kernel(neigh, H=H, W=W, TH=TH, HB=HB,
                          has_top=has_top, has_bot=has_bot, multi=multi)

    out = pl.pallas_call(
        kernel,
        out_shape=jax.ShapeDtypeStruct((K, B, H, W), out_dtype),
        grid=(B, T),
        in_specs=in_specs,
        out_specs=out_spec,
        compiler_params=pltpu.CompilerParams(**cp_kwargs),
    )(*operands)

    if out_dtype != jnp.bool_:
        # TODO(synk): only taken on toolchains without bool-ref support; costs one
        # extra 1-byte pass over the output.
        out = out.astype(jnp.bool_)
    if squeeze_batch:
        out = out[:, 0]
    return out


def _reference_affs(mask_np: np.ndarray, neighborhood) -> np.ndarray:
    """Pure-numpy mirror of the PyTorch forward (pad=True)."""
    B, H, W = mask_np.shape
    fg = mask_np.astype(np.int64) > 0  # mask.int() > 0 (truncates floats)
    affs = []
    for dy, dx in neighborhood:
        shifted = np.zeros_like(fg)
        r0, r1 = max(0, -dy), min(H, H - dy)
        c0, c1 = max(0, -dx), min(W, W - dx)
        if r0 < r1 and c0 < c1:
            shifted[:, r0:r1, c0:c1] = fg[:, r0 + dy:r1 + dy, c0 + dx:c1 + dx]
        affs.append(fg & shifted)
    return np.stack(affs, axis=0)


if __name__ == "__main__":
    key = jax.random.PRNGKey(0)
    k1, k2, k3, k4, k5 = jax.random.split(key, 5)

    def check(mask, **kw):
        out = jax.block_until_ready(affs_mask(mask, NEIGHBORHOOD, pad=True, **kw))
        ref = _reference_affs(np.asarray(mask), NEIGHBORHOOD)
        assert out.shape == ref.shape, (out.shape, ref.shape)
        assert out.dtype == jnp.bool_, out.dtype
        np.testing.assert_array_equal(np.asarray(out), ref)

    # 1) lane-aligned plane, int32 labels -> single-tile path, no padding anywhere.
    check(jax.random.randint(k1, (2, 16, 128), 0, 4, dtype=jnp.int32))

    # 2) small unaligned plane (H % 8 != 0, W % 128 != 0) -> full-dim blocks.
    check(jax.random.randint(k2, (2, 12, 40), 0, 4, dtype=jnp.int32))

    # 3) forced row tiling -> exercises halo blocks, clamped edge tiles, row masks.
    check(jax.random.randint(k3, (1, 64, 40), 0, 3, dtype=jnp.int32), tile_rows=16)

    # 4) float labels with fractional values -> mask.int() > 0 truncation semantics.
    fvals = jnp.array([0.0, 0.5, 1.0, 2.5], jnp.float32)
    check(fvals[jax.random.randint(k4, (2, 24, 136), 0, 4)], tile_rows=8)

    # 5) boolean mask input -> 1-byte input path, no widening.
    check(jax.random.randint(k5, (1, 16, 128), 0, 2, dtype=jnp.int32) > 0)

    print("KERNEL_OK")
</pallas_src>

<mosaic_0001>
module attributes {stable_mosaic.version = 11 : i64} {
  func.func @probe(%arg0: memref<8x128xi32, #tpu.memory_space<vmem>>, %arg1: memref<8x128xi32, #tpu.memory_space<vmem>>) attributes {dimension_semantics = [], scalar_prefetch = 0 : i64, scratch_operands = 0 : i64, tpu.core_type = #tpu.core_type<tc>} {
    %c0 = arith.constant 0 : index
    %c0_0 = arith.constant 0 : index
    %0 = vector.load %arg0[%c0, %c0_0] : memref<8x128xi32, #tpu.memory_space<vmem>>, vector<8x128xi32>
    %cst = arith.constant dense<0> : vector<8x128xi32>
    %1 = arith.cmpi ne, %0, %cst : vector<8x128xi32>
    %cst_1 = arith.constant dense<true> : vector<8x128xi1>
    %2 = arith.xori %1, %cst_1 : vector<8x128xi1>
    %c0_2 = arith.constant 0 : index
    %c0_3 = arith.constant 0 : index
    %3 = vector.load %arg1[%c0_2, %c0_3] : memref<8x128xi32, #tpu.memory_space<vmem>>, vector<8x128xi32>
    %4 = arith.extui %2 : vector<8x128xi1> to vector<8x128xi32>
    %cst_4 = arith.constant dense<0> : vector<8x128xi32>
    %5 = arith.cmpi ne, %3, %cst_4 : vector<8x128xi32>
    tpu.vector_store %arg1[%c0_2, %c0_3], %4 {strides = array<i32>} : memref<8x128xi32, #tpu.memory_space<vmem>>, vector<8x128xi32>,
    return
  }
}

module attributes {stable_mosaic.version = 11 : i64} {
  func.func @kernel(%arg0: i32, %arg1: i32, %arg2: memref<1x16x128xi32, #tpu.memory_space<vmem>>, %arg3: memref<5x1x16x128xi8, #tpu.memory_space<vmem>>) attributes {dimension_semantics = [#tpu.dimension_semantics<parallel>, #tpu.dimension_semantics<parallel>], iteration_bounds = array<i64: 2, 1>, scalar_prefetch = 0 : i64, scratch_operands = 0 : i64, tpu.core_type = #tpu.core_type<tc>, window_params = [{transform_indices = @transform_0, window_bounds = array<i64: 1, 16, 128>}, {transform_indices = @transform_1, window_bounds = array<i64: 5, 1, 16, 128>}]} {
    %c0 = arith.constant 0 : index
    %c0_0 = arith.constant 0 : index
    %c0_1 = arith.constant 0 : index
    %0 = vector.load %arg2[%c0, %c0_0, %c0_1] : memref<1x16x128xi32, #tpu.memory_space<vmem>>, vector<1x16x128xi32>
    %1 = vector.shape_cast %0 : vector<1x16x128xi32> to vector<16x128xi32>
    %c0_i32 = arith.constant 0 : i32
    %2 = vector.broadcast %c0_i32 : i32 to vector<16x128xi32>
    %3 = arith.cmpi sgt, %1, %2 : vector<16x128xi32>
    %4 = vector.extract_strided_slice %1 {offsets = [0, 1], sizes = [16, 127], strides = [1, 1]} : vector<16x128xi32> to vector<16x127xi32>
    %c0_i32_2 = arith.constant 0 : i32
    %5 = vector.broadcast %c0_i32_2 : i32 to vector<16x1xi32>
    %6 = tpu.concatenate %4, %5 in 1 : vector<16x127xi32>, vector<16x1xi32> -> vector<16x128xi32>
    %c0_i32_3 = arith.constant 0 : i32
    %7 = vector.broadcast %c0_i32_3 : i32 to vector<16x128xi32>
    %8 = arith.cmpi sgt, %6, %7 : vector<16x128xi32>
    %9 = arith.andi %3, %8 : vector<16x128xi1>
    %10 = arith.extui %9 : vector<16x128xi1> to vector<16x128xi8>
    %c0_4 = arith.constant 0 : index
    %c0_5 = arith.constant 0 : index
    %c0_6 = arith.constant 0 : index
    %c0_7 = arith.constant 0 : index
    %11 = vector.load %arg3[%c0_4, %c0_5, %c0_6, %c0_7] : memref<5x1x16x128xi8, #tpu.memory_space<vmem>>, vector<1x1x16x128xi8>
    %12 = vector.shape_cast %11 : vector<1x1x16x128xi8> to vector<16x128xi8>
    %13 = vector.shape_cast %10 : vector<16x128xi8> to vector<1x1x16x128xi8>
    tpu.vector_store %arg3[%c0_4, %c0_5, %c0_6, %c0_7], %13 {strides = array<i32>} : memref<5x1x16x128xi8, #tpu.memory_space<vmem>>, vector<1x1x16x128xi8>,
    %14 = vector.extract_strided_slice %1 {offsets = [1, 0], sizes = [15, 128], strides = [1, 1]} : vector<16x128xi32> to vector<15x128xi32>
    %c0_i32_8 = arith.constant 0 : i32
    %15 = vector.broadcast %c0_i32_8 : i32 to vector<1x128xi32>
    %16 = tpu.concatenate %14, %15 in 0 : vector<15x128xi32>, vector<1x128xi32> -> vector<16x128xi32>
    %c0_i32_9 = arith.constant 0 : i32
    %17 = vector.broadcast %c0_i32_9 : i32 to vector<16x128xi32>
    %18 = arith.cmpi sgt, %16, %17 : vector<16x128xi32>
    %19 = arith.andi %3, %18 : vector<16x128xi1>
    %20 = arith.extui %19 : vector<16x128xi1> to vector<16x128xi8>
    %c1 = arith.constant 1 : index
    %c0_10 = arith.constant 0 : index
    %c0_11 = arith.constant 0 : index
    %c0_12 = arith.constant 0 : index
    %21 = vector.load %arg3[%c1, %c0_10, %c0_11, %c0_12] : memref<5x1x16x128xi8, #tpu.memory_space<vmem>>, vector<1x1x16x128xi8>
    %22 = vector.shape_cast %21 : vector<1x1x16x128xi8> to vector<16x128xi8>
    %23 = vector.shape_cast %20 : vector<16x128xi8> to vector<1x1x16x128xi8>
    tpu.vector_store %arg3[%c1, %c0_10, %c0_11, %c0_12], %23 {strides = array<i32>} : memref<5x1x16x128xi8, #tpu.memory_space<vmem>>, vector<1x1x16x128xi8>,
    %c0_i32_13 = arith.constant 0 : i32
    %24 = vector.broadcast %c0_i32_13 : i32 to vector<16x3xi32>
    %25 = vector.extract_strided_slice %1 {offsets = [0, 0], sizes = [16, 125], strides = [1, 1]} : vector<16x128xi32> to vector<16x125xi32>
    %26 = tpu.concatenate %24, %25 in 1 : vector<16x3xi32>, vector<16x125xi32> -> vector<16x128xi32>
    %c0_i32_14 = arith.constant 0 : i32
    %27 = vector.broadcast %c0_i32_14 : i32 to vector<16x128xi32>
    %28 = arith.cmpi sgt, %26, %27 : vector<16x128xi32>
    %29 = arith.andi %3, %28 : vector<16x128xi1>
    %30 = arith.extui %29 : vector<16x128xi1> to vector<16x128xi8>
    %c2 = arith.constant 2 : index
    %c0_15 = arith.constant 0 : index
    %c0_16 = arith.constant 0 : index
    %c0_17 = arith.constant 0 : index
    %31 = vector.load %arg3[%c2, %c0_15, %c0_16, %c0_17] : memref<5x1x16x128xi8, #tpu.memory_space<vmem>>, vector<1x1x16x128xi8>
    %32 = vector.shape_cast %31 : vector<1x1x16x128xi8> to vector<16x128xi8>
    %33 = vector.shape_cast %30 : vector<16x128xi8> to vector<1x1x16x128xi8>
    tpu.vector_store %arg3[%c2, %c0_15, %c0_16, %c0_17], %33 {strides = array<i32>} : memref<5x1x16x128xi8, #tpu.memory_space<vmem>>, vector<1x1x16x128xi8>,
    %c0_i32_18 = arith.constant 0 : i32
    %34 = vector.broadcast %c0_i32_18 : i32 to vector<3x128xi32>
    %35 = vector.extract_strided_slice %1 {offsets = [0, 0], sizes = [13, 128], strides = [1, 1]} : vector<16x128xi32> to vector<13x128xi32>
    %36 = tpu.concatenate %34, %35 in 0 : vector<3x128xi32>, vector<13x128xi32> -> vector<16x128xi32>
    %c0_i32_19 = arith.constant 0 : i32
    %37 = vector.broadcast %c0_i32_19 : i32 to vector<16x128xi32>
    %38 = arith.cmpi sgt, %36, %37 : vector<16x128xi32>
    %39 = arith.andi %3, %38 : vector<16x128xi1>
    %40 = arith.extui %39 : vector<16x128xi1> to vector<16x128xi8>
    %c3 = arith.constant 3 : index
    %c0_20 = arith.constant 0 : index
    %c0_21 = arith.constant 0 : index
    %c0_22 = arith.constant 0 : index
    %41 = vector.load %arg3[%c3, %c0_20, %c0_21, %c0_22] : memref<5x1x16x128xi8, #tpu.memory_space<vmem>>, vector<1x1x16x128xi8>
    %42 = vector.shape_cast %41 : vector<1x1x16x128xi8> to vector<16x128xi8>
    %43 = vector.shape_cast %40 : vector<16x128xi8> to vector<1x1x16x128xi8>
    tpu.vector_store %arg3[%c3, %c0_20, %c0_21, %c0_22], %43 {strides = array<i32>} : memref<5x1x16x128xi8, #tpu.memory_space<vmem>>, vector<1x1x16x128xi8>,
    %44 = vector.extract_strided_slice %1 {offsets = [2, 0], sizes = [14, 128], strides = [1, 1]} : vector<16x128xi32> to vector<14x128xi32>
    %c0_i32_23 = arith.constant 0 : i32
    %45 = vector.broadcast %c0_i32_23 : i32 to vector<2x128xi32>
    %46 = tpu.concatenate %44, %45 in 0 : vector<14x128xi32>, vector<2x128xi32> -> vector<16x128xi32>
    %c0_i32_24 = arith.constant 0 : i32
    %47 = vector.broadcast %c0_i32_24 : i32 to vector<16x2xi32>
    %48 = vector.extract_strided_slice %46 {offsets = [0, 0], sizes = [16, 126], strides = [1, 1]} : vector<16x128xi32> to vector<16x126xi32>
    %49 = tpu.concatenate %47, %48 in 1 : vector<16x2xi32>, vector<16x126xi32> -> vector<16x128xi32>
    %c0_i32_25 = arith.constant 0 : i32
    %50 = vector.broadcast %c0_i32_25 : i32 to vector<16x128xi32>
    %51 = arith.cmpi sgt, %49, %50 : vector<16x128xi32>
    %52 = arith.andi %3, %51 : vector<16x128xi1>
    %53 = arith.extui %52 : vector<16x128xi1> to vector<16x128xi8>
    %c4 = arith.constant 4 : index
    %c0_26 = arith.constant 0 : index
    %c0_27 = arith.constant 0 : index
    %c0_28 = arith.constant 0 : index
    %54 = vector.load %arg3[%c4, %c0_26, %c0_27, %c0_28] : memref<5x1x16x128xi8, #tpu.memory_space<vmem>>, vector<1x1x16x128xi8>
    %55 = vector.shape_cast %54 : vector<1x1x16x128xi8> to vector<16x128xi8>
    %56 = vector.shape_cast %53 : vector<16x128xi8> to vector<1x1x16x128xi8>
    tpu.vector_store %arg3[%c4, %c0_26, %c0_27, %c0_28], %56 {strides = array<i32>} : memref<5x1x16x128xi8, #tpu.memory_space<vmem>>, vector<1x1x16x128xi8>,
    return
  }
  func.func @transform_0(%arg0: i32, %arg1: i32) -> (i32, i32, i32) {
    %c0_i32 = arith.constant 0 : i32
    %c0_i32_0 = arith.constant 0 : i32
    return %arg0, %arg1, %c0_i32 : i32, i32, i32
  }
  func.func @transform_1(%arg0: i32, %arg1: i32) -> (i32, i32, i32, i32) {
    %c0_i32 = arith.constant 0 : i32
    %c0_i32_0 = arith.constant 0 : i32
    %c0_i32_1 = arith.constant 0 : i32
    return %c0_i32, %arg0, %arg1, %c0_i32_0 : i32, i32, i32, i32
  }
}

</mosaic_0001>

<bundles_post_ra>
// kernel: tpu_custom_call.1
= control target key start
LH: loop header
LB: loop body
LE: loop exit
PB: predicated region body
PF: predicated region fallthrough
CT: control target
= control target key end

     0   :  { %vm19_vm1 = vmmov 1   ;;  %v20_v1 = vmov 0   ;;  %s37_s0 = inlined_call_operand.vmem [shape: s32[8,128], index: 0, kind: input, shape index: {}]   ;;  %s38_s1 = inlined_call_operand.vmem [shape: s32[8,128], index: 1, kind: output, shape index: {}]  }
   0x1   :  { %v8_v0 = vld [vmem:[%s37_s0] sm:$0xff] }
   0x2   :  { %vm9_vm0 = vcmp.ne.s32.totalorder %v8_v0, 0 }
   0x3   :  { %vm10_vm2 = vmxor %vm9_vm0, %vm19_vm1 }
   0x4   :  { %v11_v2 = vsel %vm10_vm2, 1, %v20_v1 }
   0x5   :  { %12 = vst [vmem:[%s38_s1] sm:$0xff] %v11_v2 }

// kernel: tpu_custom_call.1
= control target key start
LH: loop header
LB: loop body
LE: loop exit
PB: predicated region body
PF: predicated region fallthrough
CT: control target
= control target key end

     0   :  { %6 = vsyncpa [#allocation3], 0  ;;  %s850_s0 = inlined_call_operand.hbm [shape: s32[2,16,128], index: 0, kind: input, shape index: {}]   ;;  %s851_s1 = inlined_call_operand.hbm [shape: u8[5,2,16,128], index: 1, kind: output, shape index: {}]  }
   0x1   :  { %8 = vsyncpa [#allocation3 + $0x1], 0 }
   0x2   :  { %9 = vsyncpa [#allocation4], 0 }
   0x3   :  { %11 = vsyncpa [#allocation4 + $0x1], 0  ;;  %s621_s6 = smov 0   ;;  %s623_s7 = smov 0  }
   0x4   :  { %s625_s8 = smov 0   ;;  %s627_s9 = smov 0  }
   0x5   :  { %s629_s10 = smov 0   ;;  %s631_s11 = smov 0  }
   0x6 LB: > { %s408_s12 = sadd.s32 4294967295, %s596_s11   ;;  %s409_s13 = sadd.s32 4294967294, %s596_s11   ;;  %s596_s11 = sphi %s631_s11, %s17_s11   ;;  %s592_s10 = sphi %s629_s10, %s870_s10   ;;  %s588_s9 = sphi %s627_s9, %s869_s9   ;;  %s584_s8 = sphi %s625_s8, %s868_s8   ;;  %s580_s7 = sphi %s623_s7, %s867_s7   ;;  %s576_s6 = sphi %s621_s6, %s866_s6  }
   0x7   : > { %s29_s14 = sadd.s32 1, %s592_s10  ;;  %s38_s15 = sadd.s32 1, %s584_s8 }
   0x8   : > { %p31_p0 = scmp.ge.s32.totalorder %s29_s14, 2  ;;  %p45_p1 = scmp.ne.s32.totalorder %s584_s8, %s580_s7 }
   0x9   : > { %p46_p2 = scmp.eq.s32.totalorder %s596_s11, 0  ;;  %p51_p3 = scmp.ne.s32.totalorder %s580_s7, %s576_s6 }
   0xa   : > { %s872_s14 = smov (%p31_p0, %s29_s14), 0  ;;  %p52_p5 = scmp.eq.s32.totalorder %s408_s12, 0 }
   0xb   : > { %p662_p4 = por %p46_p2, %p45_p1  ;;  %s33_s17 = ssub.s32 %s592_s10, %s872_s14 }
   0xc   : > { %p77_p6 = scmp.eq.s32.totalorder %s408_s12, 1  ;;  %p36_p7 = scmp.eq.s32.totalorder %s33_s17, 0 }
   0xd   : > { %p668_p8 = por %p52_p5, %p51_p3  ;;  %p83_p10 = scmp.eq.s32.totalorder %s409_s13, 1 }
   0xe   : > { %p672_p9 = por %p77_p6, %p45_p1  ;;  %p450_p13 = scmp.lt.s32.totalorder %s596_s11, 2 }
   0xf   : > { %s677_s20 = scalar_select %p36_p7, %s584_s8, %s38_s15  }
  0x10   : > { %s855_s19 = scalar_select %p672_p9, 1, 0 }
  0x11   : > { %p679_p11 = por %p83_p10, %p51_p3  ;;  %s103_s22 = sand.u32 1, %s584_s8  }
  0x12   : > { %s412_s23 = sshll.u32 %s103_s22, 4  ;;  %s429_s24 = sshll.u32 %s592_s10, 8 }
  0x13   : > { %s856_s21 = scalar_select %p679_p11, 1, 0 }
  0x14   : > { %s690_s27 = scalar_lea.hbm %s850_s0, %s429_s24  ;;  %s107_s28 = scalar_lea.vmem [#allocation2], %s412_s23 }
  0x15   : > { %s116_s29 = sshll.u32 %s107_s28, 4  ;;  %p696_p0 = pnand %p450_p13, %p662_p4  ;;  %s692_s29 = int_to_ptr.vmem [resolvable:$true] %s116_s29 }
  0x16   : > { %s701_s2 = scalar_lea.sflag [#allocation3], %s103_s22  ;;  %s512_s3 = scalar_lea.hbm %s690_s27, 256 }
  0x17   : > { %p513_p2 = scmp.ne.s32.totalorder %s690_s27, %s512_s3  ;;  %p514_p3 = pneg %p696_p0 }
  0x18   : > { %s517_s12 = scalar_lea.hbm %s850_s0, 512  ;;  %p518_p4 = scmp.lt.u32.totalorder %s690_s27, %s850_s0 }
  0x19   : > { %p515_p5 = pnand %p514_p3, %p513_p2  ;;  %p519_p7 = scmp.lt.u32.totalorder %s517_s12, %s512_s3 }
  0x1a   : > { %p521_p13 = scmp.lt.u32.totalorder %s512_s3, %s690_s27 }
  0x1b   : > { %p516_p6 = pneg %p515_p5  ;;  %p520_p10 = por %p519_p7, %p518_p4 }
  0x1d   : > { %p522_p12 = por %p521_p13, %p520_p10 }
  0x1f   : > { %p523_p1 = pnand %p522_p12, %p516_p6 }
  0x21   : > { %526 = shalt.err (!%p523_p1)
}
  0x22   : > { %s527_s16 = scalar_lea.vmem %s692_s29, 256  ;;  %s598_s17 = smov [#allocation2]  }
  0x23   : > { %p528_p2 = scmp.ne.s32.totalorder %s692_s29, %s527_s16  ;;  %s532_s22 = sshll.u32 %s598_s17, 4  ;;  %s533_s22 = int_to_ptr.vmem [resolvable:$false] %s532_s22 }
  0x24   : > { %s534_s23 = scalar_lea.vmem %s533_s22, 512  ;;  %p535_p9 = scmp.lt.s32.totalorder %s692_s29, %s533_s22 }
  0x25   : > { %p530_p5 = pnand %p528_p2, %p514_p3  ;;  %p536_p4 = scmp.lt.s32.totalorder %s534_s23, %s527_s16 }
  0x27   : > { %p531_p11 = pneg %p530_p5  ;;  %p537_p7 = por %p536_p4, %p535_p9 }
  0x29   : > { %p538_p10 = pnand %p537_p7, %p531_p11 }
  0x2b   : > { %541 = shalt.err (!%p538_p10)
}
  0x2c   : > { %s599_s24 = smov 128   ;;  %s600_s25 = smov 8  }
  0x2d   : > { %445 = dma.hbm_to_vmem [thread:$0]  (!%p696_p0), %s690_s27, 256, %s692_s29, %s701_s2, %s599_s24, %s599_s24, %s600_s25  }
  0x2e   : > { %p124_p12 = scmp.lt.s32.totalorder %s596_s11, 3  ;;  %p858_p1 = scmp.ge.s32.totalorder %s596_s11, 1 }
  0x30   : > { %p125_p3 = pnand %p858_p1, %p124_p12 }
  0x31   : > { %s733_s26 = sand.u32 (!%p125_p3), 1, %s580_s7  }
  0x32   : > { %128 = sbr.rel (%p125_p3) target bundleno = 209 (0xd1), region = 24  ;;  %s416_s28 = sshll.u32 (!%p125_p3), %s733_s26, 4 }
  0x33   : > { %s131_s3 = scalar_lea.sflag (!%p125_p3), [#allocation3], %s733_s26  ;;  %s134_s4 = scalar_lea.vmem (!%p125_p3), [#allocation2], %s416_s28 }
  0x39   : > { %567 = dma.done.wait (%p668_p8), %s131_s3, 256  }
  0x3a   : > { %569 = vsyncadd (%p668_p8), %s131_s3, 4294967040  ;;  %v741_v0 = vld [vmem:[%s134_s4] sm:$0xff]  ;;  %v743_v1 = vld [vmem:[%s134_s4 + $0x8] sm:$0xff]  ;;  %vm183_vm0 = vcmask 1046528   ;;  %s601_s27 = smov 3   ;;  %s602_s29 = smov 127  }
  0x3b   : > { %204 = vrot.lane.b32.xlu1 %v741_v0, %s601_s27  ;;  %v184_v2 = vrot.slane %v741_v0, 1  ;;  %161 = vrot.lane.b32.xlu0 %v741_v0, %s602_s29  ;;  %v185_v3 = vrot.slane %v743_v1, 1  ;;  %v229_v4 = vrot.slane %v743_v1, 5  ;;  %vm227_vm1 = vcmask 1042432   ;;  %s603_s18 = smov 2   ;;  %s431_s30 = smul.u32 20, %s733_s26 }
  0x3c   : > { %v250_v5 = vrot.slane %v743_v1, 2  ;;  %v249_v6 = vrot.slane %v741_v0, 2  ;;  %v228_v7 = vrot.slane %v741_v0, 5  ;;  %vm248_vm2 = vcmask 1045504   ;;  %s277_s5 = scalar_lea.sflag [#allocation4], %s733_s26 }
  0x3d   : > { %v186_v8 = vsel %vm183_vm0, %v184_v2, %v185_v3  ;;  %v187_v9 = vsel %vm183_vm0, %v185_v3, 0  ;;  %vm159_vm3 = vcmp.gt.s32.totalorder %v741_v0, 0  ;;  %vm160_vm9 = vcmp.gt.s32.totalorder %v743_v1, 0  ;;  %s774_s2 = scalar_lea.vmem [#allocation5], %s431_s30 }
  0x3e   : > { %vm188_vm4 = vcmp.gt.s32.totalorder %v186_v8, 0  ;;  %v231_v10 = vsel %vm227_vm1, 0, %v228_v7  ;;  %vm189_vm5 = vcmp.gt.s32.totalorder %v187_v9, 0  ;;  %v230_v11 = vsel %vm227_vm1, %v228_v7, %v229_v4 }
  0x3f   : > { %206 = vrot.lane.b32.xlu1 %v743_v1, %s601_s27  ;;  %163 = vrot.lane.b32.xlu0 %v743_v1, %s602_s29  ;;  %vm190_vm6 = vmand %vm159_vm3, %vm188_vm4  ;;  %vm232_vm7 = vcmp.gt.s32.totalorder %v231_v10, 0  ;;  %v252_v12 = vsel %vm248_vm2, %v250_v5, 0  ;;  %v251_v13 = vsel %vm248_vm2, %v249_v6, %v250_v5  ;;  %vm233_vm11 = vcmp.gt.s32.totalorder %v230_v11, 0 }
  0x40   : > { %vm760_vm8 = vmand %vm159_vm3, %vm232_vm7  ;;  %v604_v15 = vmov 0   ;;  %vm208_vm1 = vcmask 23552   ;;  %vm165_vm2 = vcmask 1039360  }
  0x41   : > { %vm191_vm10 = vmand %vm160_vm9, %vm189_vm5 }
  0x42   : > { %vm192_vm12 = vmpackc.low %vm191_vm10, %vm190_vm6  ;;  %vm257_vm10 = vcmask 15360  }
  0x43   : > { %255 = vrot.lane.b32.xlu1 %v252_v12, %s603_s18  ;;  %253 = vrot.lane.b32.xlu0 %v251_v13, %s603_s18  ;;  %vm193_vm13 = vmpackc.even %vm192_vm12, %vm192_vm12 }
  0x44   : > { %v194_v16 = vsel %vm193_vm13, 16843009, %v604_v15  ;;  %vm235_vm14 = vmand %vm160_vm9, %vm233_vm11 }
  0x45   : > { %v195_v17 = vunpack.c.0.s8 %v194_v16  ;;  %v196_v18 = vunpack.c.1.s8 %v194_v16  ;;  %vm236_vm15 = vmpackc.low %vm235_vm14, %vm760_vm8 }
  0x46   : > { %vm237_vm0 = vmpackc.even %vm236_vm15, %vm236_vm15 }
  0x47   : > { %v197_v19 = vpack.c.b16 %v195_v17, %v195_v17  ;;  %v199_v20 = vpack.c.b16 %v196_v18, %v196_v18  ;;  %v238_v21 = vsel %vm237_vm0, 16843009, %v604_v15 }
  0x48   : > { %v239_v22 = vunpack.c.0.s8 %v238_v21  ;;  %v240_v23 = vunpack.c.1.s8 %v238_v21 }
  0x49   : > { %v198_v24 = vpack.c.b8 %v197_v19, %v197_v19  ;;  %v200_v25 = vpack.c.b8 %v199_v20, %v199_v20 }
  0x4a   : > { %v241_v26 = vpack.c.b16 %v239_v22, %v239_v22  ;;  %v243_v27 = vpack.c.b16 %v240_v23, %v240_v23 }
  0x4b   : > { %417 = vst [vmem:[%s774_s2 + $0x4] sm:$0x3] %v198_v24  ;;  %418 = vst [vmem:[%s774_s2 + $0x6] sm:$0x3] %v200_v25 }
  0x4c   : > { %v242_v28 = vpack.c.b8 %v241_v26, %v241_v26  ;;  %v244_v29 = vpack.c.b8 %v243_v27, %v243_v27 }
  0x4e   : > { %421 = vst [vmem:[%s774_s2 + $0xc] sm:$0x3] %v242_v28  ;;  %422 = vst [vmem:[%s774_s2 + $0xe] sm:$0x3] %v244_v29 }
  0xad   : > { %v205_v30 = vpop.permute.xlu1 %204  ;;  %v162_v31 = vpop.permute.xlu0 %161 }
  0xae   : > { %v209_v32 = vsel %vm208_vm1, 0, %v205_v30  ;;  %v166_v33 = vsel %vm165_vm2, %v162_v31, 0 }
  0xaf   : > { %vm211_vm4 = vcmp.gt.s32.totalorder %v209_v32, 0  ;;  %vm168_vm5 = vcmp.gt.s32.totalorder %v166_v33, 0 }
  0xb0   : > { %vm213_vm6 = vmand %vm159_vm3, %vm211_vm4 }
  0xb1   : > { %v207_v34 = vpop.permute.xlu1 %206  ;;  %v164_v35 = vpop.permute.xlu0 %163  ;;  %vm784_vm7 = vmand %vm159_vm3, %vm168_vm5 }
  0xb2   : > { %v210_v36 = vsel %vm208_vm1, 0, %v207_v34  ;;  %v167_v37 = vsel %vm165_vm2, %v164_v35, 0 }
  0xb3   : > { %vm212_vm8 = vcmp.gt.s32.totalorder %v210_v36, 0  ;;  %vm169_vm12 = vcmp.gt.s32.totalorder %v167_v37, 0 }
  0xb4   : > { %vm214_vm11 = vmand %vm160_vm9, %vm212_vm8 }
  0xb5   : > { %vm215_vm13 = vmpackc.low %vm214_vm11, %vm213_vm6  ;;  %v256_v39 = vpop.permute.xlu1 %255  ;;  %v254_v40 = vpop.permute.xlu0 %253 }
  0xb6   : > { %vm216_vm14 = vmpackc.even %vm215_vm13, %vm215_vm13  ;;  %v259_v41 = vsel %vm257_vm10, 0, %v256_v39  ;;  %v258_v42 = vsel %vm257_vm10, 0, %v254_v40 }
  0xb7   : > { %v217_v43 = vsel %vm216_vm14, 16843009, %v604_v15  ;;  %vm171_vm15 = vmand %vm160_vm9, %vm169_vm12  ;;  %vm261_vm0 = vcmp.gt.s32.totalorder %v259_v41, 0  ;;  %vm260_vm2 = vcmp.gt.s32.totalorder %v258_v42, 0 }
  0xb8   : > { %v218_v44 = vunpack.c.0.s8 %v217_v43  ;;  %v219_v45 = vunpack.c.1.s8 %v217_v43  ;;  %vm172_vm1 = vmpackc.low %vm171_vm15, %vm784_vm7 }
  0xb9   : > { %vm173_vm4 = vmpackc.even %vm172_vm1, %vm172_vm1 }
  0xba   : > { %v220_v46 = vpack.c.b16 %v218_v44, %v218_v44  ;;  %v222_v47 = vpack.c.b16 %v219_v45, %v219_v45  ;;  %v174_v48 = vsel %vm173_vm4, 16843009, %v604_v15  ;;  %vm263_vm5 = vmand %vm160_vm9, %vm261_vm0 }
  0xbb   : > { %v175_v49 = vunpack.c.0.s8 %v174_v48  ;;  %v176_v50 = vunpack.c.1.s8 %v174_v48  ;;  %vm262_vm6 = vmand %vm159_vm3, %vm260_vm2 }
  0xbc   : > { %v221_v51 = vpack.c.b8 %v220_v46, %v220_v46  ;;  %v223_v52 = vpack.c.b8 %v222_v47, %v222_v47  ;;  %vm264_vm7 = vmpackc.low %vm263_vm5, %vm262_vm6 }
  0xbd   : > { %v177_v53 = vpack.c.b16 %v175_v49, %v175_v49  ;;  %v179_v54 = vpack.c.b16 %v176_v50, %v176_v50  ;;  %vm265_vm8 = vmpackc.even %vm264_vm7, %vm264_vm7 }
  0xbe   : > { %419 = vst [vmem:[%s774_s2 + $0x8] sm:$0x3] %v221_v51  ;;  %420 = vst [vmem:[%s774_s2 + $0xa] sm:$0x3] %v223_v52  ;;  %v266_v55 = vsel %vm265_vm8, 16843009, %v604_v15 }
  0xbf   : > { %v178_v56 = vpack.c.b8 %v177_v53, %v177_v53  ;;  %v180_v57 = vpack.c.b8 %v179_v54, %v179_v54  ;;  %v267_v58 = vunpack.c.0.s8 %v266_v55  ;;  %v268_v59 = vunpack.c.1.s8 %v266_v55 }
  0xc1   : > { %181 = vst [vmem:[%s774_s2] sm:$0x3] %v178_v56  ;;  %182 = vst [vmem:[%s774_s2 + $0x2] sm:$0x3] %v180_v57  ;;  %v269_v60 = vpack.c.b16 %v267_v58, %v267_v58  ;;  %v271_v61 = vpack.c.b16 %v268_v59, %v268_v59 }
  0xc3   : > { %v270_v62 = vpack.c.b8 %v269_v60, %v269_v60  ;;  %v272_v63 = vpack.c.b8 %v271_v61, %v271_v61 }
  0xc5   : > { %423 = vst [vmem:[%s774_s2 + $0x10] sm:$0x3] %v270_v62  ;;  %424 = vst [vmem:[%s774_s2 + $0x12] sm:$0x3] %v272_v63 }
  0xc6   : > { %s430_s12 = sshll.u32 %s588_s9, 6  ;;  %s308_s13 = sshll.u32 %s774_s2, 4  ;;  %s309_s13 = int_to_ptr.vmem [resolvable:$true] %s308_s13 }
  0xc7   : > { %s291_s17 = scalar_lea.hbm %s851_s1, %s430_s12  ;;  %s605_s22 = smov 64  }
  0xc8   : > { %p863_p8 = scmp.ne.s32.totalorder %s855_s19, 0  ;;  %s606_s23 = smov 128  }
  0xc9   : > { %s607_s24 = smov 2   ;;  %s608_s25 = smov 32  }
  0xca   : > { %434 = sst [smem:[#allocation7]] (%p863_p8), %s605_s22  ;;  %s609_s9 = smov [#allocation6]  }
  0xcb   : > { %435 = sst [smem:[#allocation7 + $0x1]] (%p863_p8), %s606_s23  ;;  %s610_s26 = smov 0  }
  0xcc   : > { %436 = sst [smem:[#allocation7 + $0x2]] (%p863_p8), %s607_s24 }
  0xcd   : > { %437 = sst [smem:[#allocation7 + $0x3]] (%p863_p8), %s608_s25 }
  0xce   : > { %438 = sst [smem:[#allocation7 + $0x4]] (%p863_p8), %s608_s25 }
  0xcf   : > { %439 = sst [smem:[#allocation7 + $0x5]] (%p863_p8), %s607_s24 }
  0xd0   : > { %440 = dma.general (%p863_p8), %s309_s13, 320, %s291_s17, %s277_s5, %s609_s9, [#allocation7], %s610_s26, 0  }
  0xd1 PF: > { %s336_s28 = sand.u32 1, %s576_s6   ;;  %p864_p9 = scmp.ne.s32.totalorder %s856_s21, 0 }
  0xd2   : > { %p865_p11 = scmp.ge.s32.totalorder %s596_s11, 2  ;;  %s337_s3 = scalar_lea.sflag [#allocation4], %s336_s28 }
  0xd4   : > { %p447_p0 = pnand %p865_p11, %p864_p9 }
  0xd6   : > { %571 = dma.done.wait (!%p447_p0), %s337_s3, 320  }
  0xd7   : > { %573 = vsyncadd (!%p447_p0), %s337_s3, 4294966976  ;;  %s17_s11 = sadd.s32 1, %s596_s11   ;;  %s866_s6 = smov %s580_s7 }
  0xd8   : > { %p14_p6 = scmp.ge.s32.totalorder %s17_s11, 4   ;;  %s867_s7 = smov %s584_s8 }
  0xd9   : > { %s868_s8 = smov %s677_s20  ;;  %s869_s9 = smov %s592_s10 }
  0xda   : > { %s870_s10 = smov %s872_s14  ;;  %16 = sbr.rel (!%p14_p6) target bundleno = 6 (0x6), region = 78 }
  0xe1   :  { %342 = vsyncpa [#allocation3], 1 }
  0xe2   :  { %344 = vsyncpa [#allocation3 + $0x1], 1 }
  0xe3   :  { %345 = vsyncpa [#allocation4], 1 }
  0xe4   :  { %347 = vsyncpa [#allocation4 + $0x1], 1 }

</bundles_post_ra>
